<compile_context>
chip_gen: v5e
topology: v5e:2x2
jax: 0.10.0
libtpu: 0.0.40
codegen_flags: <defaults>
</compile_context>

<pallas_src>
import functools

import jax
import jax.numpy as jnp
from jax.experimental import pallas as pl
from jax.experimental.pallas import tpu as pltpu

_TM_MAX = 512


def _round_up(x: int, m: int) -> int:
    return ((x + m - 1) // m) * m


# ---------------------------------------------------------------------------
# Kernels
# ---------------------------------------------------------------------------
def _linear_kernel_f32out(x_ref, w_ref, b_ref, o_ref):
    """f32 output: accumulate directly into the k-resident output block.

    x_ref: (tm, tk) bf16 activation tile
    w_ref: (tk, tn) bf16 weight tile (pre-transposed to [D_in, D_out])
    b_ref: (1, tn)  f32 bias tile
    o_ref: (tm, tn) f32 output tile; its block index ignores k, so it stays
           resident in VMEM across the reduction axis and is the accumulator.
    """
    @pl.when(pl.program_id(2) == 0)
    def _init():
        o_ref[...] = jnp.broadcast_to(b_ref[...], o_ref.shape)

    o_ref[...] += jnp.dot(
        x_ref[...], w_ref[...], preferred_element_type=jnp.float32
    )


def _linear_kernel_acc(x_ref, w_ref, b_ref, o_ref, acc_ref):
    """Non-f32 output: explicit f32 VMEM accumulator, cast at the last k step."""
    k = pl.program_id(2)

    @pl.when(k == 0)
    def _init():
        acc_ref[...] = jnp.broadcast_to(b_ref[...], acc_ref.shape)

    acc_ref[...] += jnp.dot(
        x_ref[...], w_ref[...], preferred_element_type=jnp.float32
    )

    @pl.when(k == pl.num_programs(2) - 1)
    def _finalize():
        o_ref[...] = acc_ref[...].astype(o_ref.dtype)


# ---------------------------------------------------------------------------
# Tile planning (generation-aware)
# ---------------------------------------------------------------------------
def _vmem_budget_bytes() -> int:
    """Scoped-VMEM budget: ~90 MiB on v5e/v6e (128 MiB phys), ~45 MiB on v7x."""
    try:
        phys = int(pltpu.get_tpu_info().vmem_capacity_bytes)
    except Exception:
        phys = 128 * 1024 * 1024
    if phys <= 0:
        phys = 128 * 1024 * 1024
    return min(int(phys * 0.7), 100 * 1024 * 1024)


def _tile_vmem_bytes(tm, tk, tn, in_itemsize):
    # 2x double-buffered inputs (x tile, w tile, bias) + double-buffered f32
    # output tile + worst-case f32 scratch accumulator.
    return (2 * (tm * tk + tk * tn + tn) * in_itemsize
            + 2 * tm * tn * 4
            + tm * tn * 4)


def _pick_nk_tiles(d_in, d_out, budget, in_itemsize):
    din128 = _round_up(d_in, 128)
    dout128 = _round_up(d_out, 128)

    tn = min(512, dout128)
    # Keep >= 2 N tiles when the size allows it so v7x's two TensorCores both
    # get work (free on v5e/v6e).
    if dout128 // tn < 2 and dout128 >= 256 and (dout128 // 2) % 128 == 0:
        tn = dout128 // 2

    # Prefer a fully K-resident tile (reduction grid axis collapses to 1);
    # otherwise shrink K then N until the double-buffered tiles fit the budget.
    tk = din128
    while _tile_vmem_bytes(_TM_MAX, tk, tn, in_itemsize) > budget and tk > 128:
        tk = _round_up(max(128, tk // 2), 128)
    while _tile_vmem_bytes(_TM_MAX, tk, tn, in_itemsize) > budget and tn > 128:
        tn = _round_up(max(128, tn // 2), 128)
    return tn, tk


# ---------------------------------------------------------------------------
# One-time parameter preparation (OUTSIDE the per-call forward)
# ---------------------------------------------------------------------------
def prepare_linear_params(weight, bias, compute_dtype=jnp.bfloat16):
    """Transpose to [D_in, D_out], pad to tile multiples, cast to bf16 -- once.

    weight: [D_out, D_in] (PyTorch nn.Linear layout), bias: [D_out].
    Returns (w_t, b2, meta) to pass to linear_reg_apply.
    """
    d_out, d_in = weight.shape
    budget = _vmem_budget_bytes()
    in_itemsize = jnp.dtype(compute_dtype).itemsize
    tn, tk = _pick_nk_tiles(d_in, d_out, budget, in_itemsize)
    dout_pad = _round_up(d_out, tn)
    din_pad = _round_up(d_in, tk)

    w_t = jnp.pad(weight.T, ((0, din_pad - d_in), (0, dout_pad - d_out)))
    w_t = w_t.astype(compute_dtype)
    b2 = jnp.pad(bias, (0, dout_pad - d_out)).astype(jnp.float32)
    b2 = b2.reshape(1, dout_pad)

    meta = (int(d_out), int(d_in), int(tn), int(tk), int(budget))
    return w_t, b2, meta


# ---------------------------------------------------------------------------
# Per-call forward
# ---------------------------------------------------------------------------
@functools.partial(jax.jit, static_argnames=("meta",))
def linear_reg_apply(x, w_t, b2, meta):
    """y = x @ W^T + b with pre-prepared (transposed / padded / bf16) weights."""
    d_out, d_in, tn, tk, vmem_budget = meta
    batch = x.shape[0]
    out_dtype = x.dtype
    compute_dtype = w_t.dtype
    din_pad, dout_pad = w_t.shape

    # bf16 second-minor packing granule is 16 sublanes (f32: 8).
    sub = 16 if jnp.dtype(compute_dtype).itemsize < 4 else 8
    tm = min(_TM_MAX, _round_up(batch, sub))
    b_pad = _round_up(batch, tm)

    x_p = x.astype(compute_dtype)
    if (b_pad, din_pad) != (batch, d_in):
        x_p = jnp.pad(x_p, ((0, b_pad - batch), (0, din_pad - d_in)))

    grid = (b_pad // tm, dout_pad // tn, din_pad // tk)
    n_m_tiles, n_n_tiles = grid[0], grid[1]

    out_is_f32 = out_dtype == jnp.float32
    kernel = _linear_kernel_f32out if out_is_f32 else _linear_kernel_acc
    scratch = [] if out_is_f32 else [pltpu.VMEM((tm, tn), jnp.float32)]

    # Account for operand re-streaming under the (i, j, k) grid.
    out_itemsize = jnp.dtype(out_dtype).itemsize
    cost = pl.CostEstimate(
        flops=2 * b_pad * din_pad * dout_pad,
        transcendentals=0,
        bytes_accessed=(
            x_p.size * x_p.dtype.itemsize * n_n_tiles
            + w_t.size * w_t.dtype.itemsize * n_m_tiles
            + b2.size * b2.dtype.itemsize * n_m_tiles
            + b_pad * dout_pad * out_itemsize
        ),
    )

    # TODO(synk): for the GEMV-like small-B, multi-K regime, try
    # pipeline_mode=pl.Buffered(3) on the weight BlockSpec to deepen buffering.
    out_padded = pl.pallas_call(
        kernel,
        out_shape=jax.ShapeDtypeStruct((b_pad, dout_pad), out_dtype),
        grid_spec=pltpu.PrefetchScalarGridSpec(
            num_scalar_prefetch=0,
            grid=grid,
            in_specs=[
                pl.BlockSpec((tm, tk), lambda i, j, k: (i, k)),   # activations
                pl.BlockSpec((tk, tn), lambda i, j, k: (k, j)),   # W^T (canonical RHS)
                pl.BlockSpec((1, tn), lambda i, j, k: (0, j)),    # bias (f32)
            ],
            out_specs=pl.BlockSpec((tm, tn), lambda i, j, k: (i, j)),
            scratch_shapes=scratch,
        ),
        compiler_params=pltpu.CompilerParams(
            dimension_semantics=("parallel", "parallel", "arbitrary"),
            vmem_limit_bytes=vmem_budget,
        ),
        cost_estimate=cost,
    )(x_p, w_t, b2)

    return out_padded[:batch, :d_out]


def linear_reg_forward(x, weight, bias, *, force_pallas=False):
    """nn.Linear semantics: y = x @ weight.T + bias.

    Small shapes fall back to plain XLA (the Pallas kernel is pure fixed
    overhead there) unless force_pallas=True.
    """
    batch, d_in = x.shape
    d_out = weight.shape[0]
    if not force_pallas and (2 * batch * d_in * d_out) < (1 << 22):
        return x @ weight.T.astype(x.dtype) + bias.astype(x.dtype)
    w_t, b2, meta = prepare_linear_params(weight, bias)
    return linear_reg_apply(x, w_t, b2, meta)


if __name__ == "__main__":
    # Small shapes consistent with the module: input_dim=32, output_dim=16, batch=8.
    batch, input_dim, output_dim = 8, 32, 16

    key = jax.random.PRNGKey(0)
    kx, kw, kb = jax.random.split(key, 3)

    # Deterministic "PyTorch-like" init: U(-1/sqrt(fan_in), 1/sqrt(fan_in)).
    bound = 1.0 / (input_dim ** 0.5)
    weight = jax.random.uniform(kw, (output_dim, input_dim), jnp.float32,
                                minval=-bound, maxval=bound)
    bias = jax.random.uniform(kb, (output_dim,), jnp.float32,
                              minval=-bound, maxval=bound)
    x = jax.random.normal(kx, (batch, input_dim), jnp.float32)

    # One-time prep (transpose + pad + bf16 cast), then the Pallas forward.
    w_t, b2, meta = prepare_linear_params(weight, bias)
    out = linear_reg_apply(x, w_t, b2, meta)
    out = jax.block_until_ready(out)

    assert out.shape == (batch, output_dim)

    # Tight check against a matching bf16-operand / f32-accumulate reference.
    ref_bf16 = jnp.dot(x.astype(jnp.bfloat16), weight.T.astype(jnp.bfloat16),
                       preferred_element_type=jnp.float32) + bias
    assert jnp.allclose(out, ref_bf16, atol=1e-4, rtol=1e-4), (
        "max|diff| vs bf16 ref = %g" % float(jnp.max(jnp.abs(out - ref_bf16))))

    # Loose check against full-f32 nn.Linear semantics (bf16 operand rounding).
    ref_f32 = x @ weight.T + bias
    assert jnp.allclose(out, ref_f32, atol=3e-2, rtol=3e-2)

    print("KERNEL_OK")
</pallas_src>

<mosaic_0001>
module attributes {stable_mosaic.version = 11 : i64} {
  func.func @_linear_kernel_f32out(%arg0: i32, %arg1: i32, %arg2: i32, %arg3: memref<16x128xbf16, #tpu.memory_space<vmem>>, %arg4: memref<128x128xbf16, #tpu.memory_space<vmem>>, %arg5: memref<1x128xf32, #tpu.memory_space<vmem>>, %arg6: memref<16x128xf32, #tpu.memory_space<vmem>>) attributes {dimension_semantics = [#tpu.dimension_semantics<parallel>, #tpu.dimension_semantics<parallel>, #tpu.dimension_semantics<arbitrary>], iteration_bounds = array<i64: 1, 1, 1>, scalar_prefetch = 0 : i64, scratch_operands = 0 : i64, tpu.core_type = #tpu.core_type<tc>, window_params = [{transform_indices = @transform_0, window_bounds = array<i64: 16, 128>}, {transform_indices = @transform_1, window_bounds = array<i64: 128, 128>}, {transform_indices = @transform_2, window_bounds = array<i64: 1, 128>}, {transform_indices = @transform_3, window_bounds = array<i64: 16, 128>}]} {
    %c0_i32 = arith.constant 0 : i32
    %0 = arith.cmpi eq, %arg2, %c0_i32 : i32
    %1 = arith.extui %0 : i1 to i32
    %c0_i32_0 = arith.constant 0 : i32
    %2 = arith.cmpi ne, %1, %c0_i32_0 : i32
    scf.if %2 {
      %c0_8 = arith.constant 0 : index
      %c0_9 = arith.constant 0 : index
      %9 = vector.load %arg5[%c0_8, %c0_9] : memref<1x128xf32, #tpu.memory_space<vmem>>, vector<1x128xf32>
      %10 = vector.shape_cast %9 : vector<1x128xf32> to vector<1x128xf32>
      %11 = vector.broadcast %10 : vector<1x128xf32> to vector<16x128xf32>
      %c0_10 = arith.constant 0 : index
      %c0_11 = arith.constant 0 : index
      %12 = vector.load %arg6[%c0_10, %c0_11] : memref<16x128xf32, #tpu.memory_space<vmem>>, vector<16x128xf32>
      tpu.vector_store %arg6[%c0_10, %c0_11], %11 {strides = array<i32>} : memref<16x128xf32, #tpu.memory_space<vmem>>, vector<16x128xf32>,
    } else {
    }
    %c0 = arith.constant 0 : index
    %c0_1 = arith.constant 0 : index
    %3 = vector.load %arg6[%c0, %c0_1] : memref<16x128xf32, #tpu.memory_space<vmem>>, vector<16x128xf32>
    %c0_2 = arith.constant 0 : index
    %c0_3 = arith.constant 0 : index
    %4 = vector.load %arg3[%c0_2, %c0_3] : memref<16x128xbf16, #tpu.memory_space<vmem>>, vector<16x128xbf16>
    %c0_4 = arith.constant 0 : index
    %c0_5 = arith.constant 0 : index
    %5 = vector.load %arg4[%c0_4, %c0_5] : memref<128x128xbf16, #tpu.memory_space<vmem>>, vector<128x128xbf16>
    %cst = arith.constant dense<0.000000e+00> : vector<16x128xf32>
    %6 = tpu.matmul %4, %5, %cst {dimension_numbers = #tpu.dot_dimension_numbers<[1], [0], [0], [1], [0, 0, 1, 1], [], []>} : vector<16x128xbf16>, vector<128x128xbf16>, vector<16x128xf32> -> vector<16x128xf32>
    %7 = arith.addf %3, %6 : vector<16x128xf32>
    %c0_6 = arith.constant 0 : index
    %c0_7 = arith.constant 0 : index
    %8 = vector.load %arg6[%c0_6, %c0_7] : memref<16x128xf32, #tpu.memory_space<vmem>>, vector<16x128xf32>
    tpu.vector_store %arg6[%c0_6, %c0_7], %7 {strides = array<i32>} : memref<16x128xf32, #tpu.memory_space<vmem>>, vector<16x128xf32>,
    return
  }
  func.func @transform_0(%arg0: i32, %arg1: i32, %arg2: i32) -> (i32, i32) {
    %c0_i32 = arith.constant 0 : i32
    return %arg0, %arg2 : i32, i32
  }
  func.func @transform_1(%arg0: i32, %arg1: i32, %arg2: i32) -> (i32, i32) {
    %c0_i32 = arith.constant 0 : i32
    return %arg2, %arg1 : i32, i32
  }
  func.func @transform_2(%arg0: i32, %arg1: i32, %arg2: i32) -> (i32, i32) {
    %c0_i32 = arith.constant 0 : i32
    %c0_i32_0 = arith.constant 0 : i32
    return %c0_i32, %arg1 : i32, i32
  }
  func.func @transform_3(%arg0: i32, %arg1: i32, %arg2: i32) -> (i32, i32) {
    %c0_i32 = arith.constant 0 : i32
    return %arg0, %arg1 : i32, i32
  }
}

</mosaic_0001>

<bundles_post_ra>
// kernel: linear_reg_apply.1
= control target key start
LH: loop header
LB: loop body
LE: loop exit
PB: predicated region body
PF: predicated region fallthrough
CT: control target
= control target key end

     0   :  { %8 = vsyncpa [#allocation3], 0  ;;  %s212_s15 = smov [#allocation2]   ;;  %s213_s17 = smov 64   ;;  %s250_s0 = inlined_call_operand.vmem [shape: bf16[16,128], index: 0, kind: input, shape index: {}]   ;;  %s251_s1 = inlined_call_operand.hbm [shape: bf16[128,128], index: 1, kind: input, shape index: {}]   ;;  %s252_s2 = inlined_call_operand.vmem [shape: f32[1,128], index: 2, kind: input, shape index: {}]   ;;  %s253_s3 = inlined_call_operand.vmem [shape: f32[16,128], index: 3, kind: output, shape index: {}]  }
   0x1   :  { %s15_s14 = sshll.u32 %s251_s1, 4  ;;  %s17_s16 = sshll.u32 %s212_s15, 4  ;;  %s16_s14 = int_to_ptr.hbm [resolvable:$true] %s15_s14  ;;  %s18_s16 = int_to_ptr.vmem [resolvable:$true] %s17_s16 }
   0x2   :  { %s214_s18 = smov 4  }
   0x3   :  { %23 = dma.hbm_to_vmem [thread:$0]  %s16_s14, 1024, %s18_s16, [#allocation3], %s213_s17, %s213_s17, %s214_s18  }
   0x4   :  { %210 = dma.done.wait [#allocation3], 1024  }
   0x5   :  { %211 = vsyncadd [#allocation3], 4294966272  ;;  %v181_v0 = vld [vmem:[#allocation2 + $0x38] sm:$0xff]  ;;  %v180_v1 = vld [vmem:[#allocation2 + $0x30] sm:$0xff] }
   0x6   :  { %114 = vmatpush.bf16.msra.mxu0 %v181_v0  ;;  %v179_v2 = vld [vmem:[#allocation2 + $0x28] sm:$0xff]  ;;  %v178_v3 = vld [vmem:[#allocation2 + $0x20] sm:$0xff]  ;;  %v177_v4 = vld [vmem:[#allocation2 + $0x18] sm:$0xff] }
   0x7   :  { %v176_v5 = vld [vmem:[#allocation2 + $0x10] sm:$0xff]  ;;  %v175_v6 = vld [vmem:[#allocation2 + $0x8] sm:$0xff]  ;;  %v174_v7 = vld [vmem:[#allocation2] sm:$0xff] }
   0x8   :  { %v173_v8 = vld [vmem:[%s250_s0] sm:$0xff] }
   0x9   :  { %v185_v9 = vld [vmem:[%s252_s2] ss:$0 sm:$0xff] }
   0xa   :  { %115 = vmatpush.bf16.msra.mxu0 %v180_v1 }
   0xe   :  { %116 = vmatpush.bf16.msra.mxu0 %v179_v2 }
  0x12   :  { %117 = vmatpush.bf16.msra.mxu0 %v178_v3 }
  0x16   :  { %118 = vmatpush.bf16.msra.mxu0 %v177_v4 }
  0x1a   :  { %119 = vmatpush.bf16.msra.mxu0 %v176_v5 }
  0x1e   :  { %120 = vmatpush.bf16.msra.mxu0 %v175_v6 }
  0x22   :  { %121 = vmatpush.bf16.msra.mxu0 %v174_v7 }
  0x25   :  { %122 = vmatmul.bf16.vlgmr.msra.gmra.mxu0 %v173_v8 }
  0xa2   :  { %v123_v10 = vpop.f32.mrf.mxu0 }
  0xa3   :  { %v128_v11 = vadd.f32 %v185_v9, %v123_v10 }
  0xa5   :  { %130 = vst [vmem:[%s253_s3] sm:$0xff] %v128_v11 }
  0xaa   :  { %v125_v12 = vpop.f32.mrf.mxu0 }
  0xab   :  { %v129_v13 = vadd.f32 %v185_v9, %v125_v12 }
  0xad   :  { %131 = vst [vmem:[%s253_s3 + $0x8] sm:$0xff] %v129_v13 }
  0xae   :  { %136 = vsyncpa [#allocation3], 1 }

</bundles_post_ra>
